<compile_context>
chip_gen: v5e
topology: v5e:2x2
jax: 0.10.0
libtpu: 0.0.40
codegen_flags: <defaults>
</compile_context>

<pallas_src>
import jax
import jax.numpy as jnp
from jax import lax
from jax.experimental import pallas as pl
from jax.experimental.pallas import tpu as pltpu


# --------------------------------- kernels ----------------------------------

def _memory_fused_kernel(x_ref, wT_ref, b_ref, out_ref):
    """Single-program fused path (grid == (1,)): Linear + softmax + alpha @ lin^T."""
    x = x_ref[...]
    # Linear: MXU feed at the native input dtype, f32 accumulate.
    lin = jnp.dot(x, wT_ref[...], preferred_element_type=jnp.float32) \
        + b_ref[...].astype(jnp.float32)                             # (B, M) f32

    # Softmax over the last dim (legacy nn.Softmax() on 2-D == dim=1), kept in f32.
    mx = jnp.max(lin, axis=-1, keepdims=True)
    ex = jnp.exp(lin - mx)
    alpha = ex / jnp.sum(ex, axis=-1, keepdims=True)                 # exact divide

    # Second matmul: contract the M axis of both operands (alpha @ lin^T).
    if x.dtype == jnp.bfloat16:
        # Feed the MXU in bf16 (flash-attention style); accumulate in f32.
        alpha_mm, lin_mm = alpha.astype(jnp.bfloat16), lin.astype(jnp.bfloat16)
    else:
        alpha_mm, lin_mm = alpha, lin
    out = lax.dot_general(alpha_mm, lin_mm,
                          dimension_numbers=(((1,), (1,)), ((), ())),
                          preferred_element_type=jnp.float32)        # (B, B)
    out_ref[...] = out.astype(out_ref.dtype)


def _linear_kernel(x_ref, wT_ref, b_ref, lin_ref, linT_ref):
    """Tiled path, pass 1: run the Linear exactly once for the whole batch."""
    lin = jnp.dot(x_ref[...], wT_ref[...], preferred_element_type=jnp.float32) \
        + b_ref[...].astype(jnp.float32)                             # (B, M) f32
    lin_ref[...] = lin
    # One-time transpose so pass 2's matmul is a standard (tb,M)x(M,B) MXU feed
    # (avoids a per-program XLU transpose of a transposed RHS).
    linT_ref[...] = lin.T.astype(linT_ref.dtype)                     # (M, B)


def _softmax_mm_kernel(lin_rows_ref, linT_ref, out_ref):
    """Tiled path, pass 2: per output-row tile, softmax (f32) + alpha @ lin^T."""
    lin_rows = lin_rows_ref[...]                                     # (tb, M) f32
    mx = jnp.max(lin_rows, axis=-1, keepdims=True)
    ex = jnp.exp(lin_rows - mx)
    alpha = (ex / jnp.sum(ex, axis=-1, keepdims=True)).astype(linT_ref.dtype)
    out_ref[...] = jnp.dot(alpha, linT_ref[...],
                           preferred_element_type=jnp.float32).astype(out_ref.dtype)


# --------------------------------- wrapper -----------------------------------

def _clamp_vmem(nbytes):
    """Real footprint + 25% headroom (+2 MiB slack), capped at 48 MiB (v7x-safe)."""
    return int(min(48 << 20, max(4 << 20, int(nbytes * 1.25) + (2 << 20))))


def _pick_row_tile(B, M, out_itemsize, budget_bytes):
    """Largest tb dividing B, multiple of 8, whose double-buffered (tb,M) input and
    (tb,B) output blocks fit in budget_bytes. Falls back to 8 (or B) if none fits."""
    best = None
    tb = 8
    while tb <= B:
        if B % tb == 0:
            blk = 2 * (4 * tb * M) + 2 * (out_itemsize * tb * B)
            if blk <= budget_bytes:
                best = tb
        tb += 8
    if best is None:
        best = 8 if B % 8 == 0 else B
    return best


def memory_forward(encoder_state, weight, bias, *, row_tile=None):
    """Pallas implementation of Memory.forward.

    encoder_state: (B, input_size); weight: (mem_size, input_size); bias: (mem_size,).
    Returns the (B, B) `memory` matrix.
    """
    encoder_state = jnp.asarray(encoder_state)
    weight = jnp.asarray(weight)
    bias = jnp.asarray(bias)

    B, In = encoder_state.shape
    M, In2 = weight.shape
    assert In == In2, "weight / encoder_state feature mismatch"
    assert bias.shape == (M,), "bias shape mismatch"

    out_dtype = encoder_state.dtype
    itm = jnp.dtype(encoder_state.dtype).itemsize
    out_itm = jnp.dtype(out_dtype).itemsize
    mm_dtype = jnp.bfloat16 if encoder_state.dtype == jnp.bfloat16 else jnp.float32
    mm_itm = jnp.dtype(mm_dtype).itemsize

    wT = weight.T                      # (In, M) one-time glue-side transpose
    bias2 = bias.reshape(1, M)

    # Working set of the fully-fused single program (inputs + f32 intermediates + out).
    fused_bytes = (itm * (B * In + In * M + M)
                   + 4 * (3 * B * M)
                   + 4 * B * B + out_itm * B * B)

    if row_tile is None:
        # Default: one program (no per-step grid overhead, no Linear recompute)
        # unless the full-batch-resident working set would blow the VMEM budget.
        tb = B if fused_bytes <= (20 << 20) else _pick_row_tile(B, M, out_itm, 16 << 20)
    else:
        tb = int(row_tile)
    assert B % tb == 0 and (tb == B or tb % 8 == 0), \
        "row tile must divide B and align to 8 sublanes"

    if tb == B:
        # -------------------- single fused program, grid = (1,) --------------------
        cost = pl.CostEstimate(
            flops=int(2 * B * In * M + 2 * B * B * M + 5 * B * M),
            transcendentals=int(B * M),
            bytes_accessed=int(itm * (B * In + In * M + M) + out_itm * B * B))
        return pl.pallas_call(
            _memory_fused_kernel,
            out_shape=jax.ShapeDtypeStruct((B, B), out_dtype),
            grid=(1,),
            in_specs=[
                pl.BlockSpec((B, In), lambda i: (0, 0)),   # full encoder_state
                pl.BlockSpec((In, M), lambda i: (0, 0)),   # W^T
                pl.BlockSpec((1, M), lambda i: (0, 0)),    # bias
            ],
            out_specs=pl.BlockSpec((B, B), lambda i: (0, 0)),
            compiler_params=pltpu.CompilerParams(
                dimension_semantics=("arbitrary",),
                vmem_limit_bytes=_clamp_vmem(fused_bytes)),
            cost_estimate=cost,
        )(encoder_state, wT, bias2)

    # ------------------------- two-pass tiled path (large B) -----------------------
    # Pass 1: the Linear runs exactly once for the whole batch.
    lin_bytes = itm * (B * In + In * M + M) + 2 * 4 * B * M + mm_itm * M * B
    cost1 = pl.CostEstimate(
        flops=int(2 * B * In * M),
        transcendentals=0,
        bytes_accessed=int(itm * (B * In + In * M + M) + 4 * B * M + mm_itm * M * B))
    lin_all, lin_allT = pl.pallas_call(
        _linear_kernel,
        out_shape=(jax.ShapeDtypeStruct((B, M), jnp.float32),
                   jax.ShapeDtypeStruct((M, B), mm_dtype)),
        grid=(1,),
        in_specs=[
            pl.BlockSpec((B, In), lambda i: (0, 0)),
            pl.BlockSpec((In, M), lambda i: (0, 0)),
            pl.BlockSpec((1, M), lambda i: (0, 0)),
        ],
        out_specs=(pl.BlockSpec((B, M), lambda i: (0, 0)),
                   pl.BlockSpec((M, B), lambda i: (0, 0))),
        compiler_params=pltpu.CompilerParams(
            dimension_semantics=("arbitrary",),
            vmem_limit_bytes=_clamp_vmem(lin_bytes)),
        cost_estimate=cost1,
    )(encoder_state, wT, bias2)

    # Pass 2: softmax + alpha @ lin^T, tiled over output rows ("parallel" == megacore
    # safe; no cross-program state). lin^T's block index is constant across the grid,
    # so Pallas skips its re-DMA between steps.
    grid = (B // tb,)
    pass2_bytes = (2 * (4 * tb * M)            # double-buffered lin row tile
                   + mm_itm * M * B            # grid-invariant lin^T
                   + 2 * (out_itm * tb * B)    # double-buffered output tile
                   + 4 * (2 * tb * M + tb * B))  # softmax / f32 result intermediates
    cost2 = pl.CostEstimate(
        flops=int(2 * B * B * M + 5 * B * M),
        transcendentals=int(B * M),
        bytes_accessed=int(4 * B * M + mm_itm * M * B + out_itm * B * B))
    return pl.pallas_call(
        _softmax_mm_kernel,
        out_shape=jax.ShapeDtypeStruct((B, B), out_dtype),
        grid=grid,
        in_specs=[
            pl.BlockSpec((tb, M), lambda i: (i, 0)),   # this program's rows of lin_out
            pl.BlockSpec((M, B), lambda i: (0, 0)),    # full lin_out^T (grid-invariant)
        ],
        out_specs=pl.BlockSpec((tb, B), lambda i: (i, 0)),
        compiler_params=pltpu.CompilerParams(
            dimension_semantics=("parallel",),
            vmem_limit_bytes=_clamp_vmem(pass2_bytes)),
        cost_estimate=cost2,
    )(lin_all, lin_allT)


# --------------------------------- reference ---------------------------------

def _reference(encoder_state, weight, bias):
    """Pure-JAX reference of the exact PyTorch forward (print() calls skipped)."""
    lin = encoder_state @ weight.T + bias[None, :]
    alpha = jax.nn.softmax(lin, axis=-1)   # legacy nn.Softmax() on 2-D -> dim=1
    return alpha @ lin.T


if __name__ == "__main__":
    # Small, deterministic problem sizes consistent with the module.
    B = 16            # batch of flattened encoder states
    input_size = 32   # hidden_size + num_layers * num_directions
    mem_size = 16     # Linear out features ("number of memory slots")

    key = jax.random.PRNGKey(0)
    k_x, k_w, k_b = jax.random.split(key, 3)

    encoder_state = jax.random.normal(k_x, (B, input_size), dtype=jnp.float32)

    # Deterministic nn.Linear-style init: U(-1/sqrt(In), 1/sqrt(In)).
    bound = 1.0 / jnp.sqrt(jnp.float32(input_size))
    weight = jax.random.uniform(k_w, (mem_size, input_size),
                                minval=-bound, maxval=bound, dtype=jnp.float32)
    bias = jax.random.uniform(k_b, (mem_size,),
                              minval=-bound, maxval=bound, dtype=jnp.float32)

    ref = jax.block_until_ready(_reference(encoder_state, weight, bias))

    # Default path: single fused program (grid == (1,)).
    out = jax.block_until_ready(memory_forward(encoder_state, weight, bias))
    assert out.shape == (B, B)
    # Softmax divide is exact now; tolerance only covers possible MXU f32
    # decomposition differences between the Pallas dots and the XLA reference dots.
    assert jnp.allclose(out, ref, atol=2e-3, rtol=2e-3), "fused kernel mismatch"

    # Tiled two-pass path (grid == (2,)): Linear runs once, softmax+mm tiled by rows.
    out_t = jax.block_until_ready(
        memory_forward(encoder_state, weight, bias, row_tile=8))
    assert jnp.allclose(out_t, ref, atol=2e-3, rtol=2e-3), "tiled kernel mismatch"

    print("KERNEL_OK")
</pallas_src>

<mosaic_0001>
module attributes {stable_mosaic.version = 11 : i64} {
  func.func @_memory_fused_kernel(%arg0: i32, %arg1: memref<16x32xf32, #tpu.memory_space<vmem>>, %arg2: memref<32x16xf32, #tpu.memory_space<vmem>>, %arg3: memref<1x16xf32, #tpu.memory_space<vmem>>, %arg4: memref<16x16xf32, #tpu.memory_space<vmem>>) attributes {dimension_semantics = [#tpu.dimension_semantics<arbitrary>], iteration_bounds = array<i64: 1>, scalar_prefetch = 0 : i64, scratch_operands = 0 : i64, tpu.core_type = #tpu.core_type<tc>, window_params = [{pipeline_mode = #tpu.pipeline_mode<synchronous>, transform_indices = @transform_0, window_bounds = array<i64: 16, 32>}, {pipeline_mode = #tpu.pipeline_mode<synchronous>, transform_indices = @transform_1, window_bounds = array<i64: 32, 16>}, {pipeline_mode = #tpu.pipeline_mode<synchronous>, transform_indices = @transform_2, window_bounds = array<i64: 1, 16>}, {pipeline_mode = #tpu.pipeline_mode<synchronous>, transform_indices = @transform_3, window_bounds = array<i64: 16, 16>}]} {
    %c0 = arith.constant 0 : index
    %c0_0 = arith.constant 0 : index
    %0 = vector.load %arg1[%c0, %c0_0] : memref<16x32xf32, #tpu.memory_space<vmem>>, vector<16x32xf32>
    %c0_1 = arith.constant 0 : index
    %c0_2 = arith.constant 0 : index
    %1 = vector.load %arg2[%c0_1, %c0_2] : memref<32x16xf32, #tpu.memory_space<vmem>>, vector<32x16xf32>
    %cst = arith.constant dense<0.000000e+00> : vector<16x16xf32>
    %2 = tpu.matmul %0, %1, %cst {dimension_numbers = #tpu.dot_dimension_numbers<[1], [0], [0], [1], [0, 0, 1, 1], [], []>} : vector<16x32xf32>, vector<32x16xf32>, vector<16x16xf32> -> vector<16x16xf32>
    %c0_3 = arith.constant 0 : index
    %c0_4 = arith.constant 0 : index
    %3 = vector.load %arg3[%c0_3, %c0_4] : memref<1x16xf32, #tpu.memory_space<vmem>>, vector<1x16xf32>
    %4 = vector.broadcast %3 : vector<1x16xf32> to vector<16x16xf32>
    %5 = arith.addf %2, %4 : vector<16x16xf32>
    %cst_5 = arith.constant dense<0xFF800000> : vector<16xf32>
    %6 = vector.multi_reduction <maximumf>, %5, %cst_5 [1] : vector<16x16xf32> to vector<16xf32>
    %7 = vector.shape_cast %6 : vector<16xf32> to vector<16x1xf32>
    %8 = vector.broadcast %7 : vector<16x1xf32> to vector<16x16xf32>
    %9 = arith.subf %5, %8 : vector<16x16xf32>
    %10 = math.exp %9 : vector<16x16xf32>
    %cst_6 = arith.constant dense<0.000000e+00> : vector<16xf32>
    %11 = vector.multi_reduction <add>, %10, %cst_6 [1] : vector<16x16xf32> to vector<16xf32>
    %12 = vector.shape_cast %11 : vector<16xf32> to vector<16x1xf32>
    %13 = vector.broadcast %12 : vector<16x1xf32> to vector<16x16xf32>
    %14 = arith.divf %10, %13 : vector<16x16xf32>
    %cst_7 = arith.constant dense<0.000000e+00> : vector<16x16xf32>
    %15 = tpu.matmul %14, %5, %cst_7 {dimension_numbers = #tpu.dot_dimension_numbers<[1], [1], [0], [0], [0, 0, 1, 0], [], []>} : vector<16x16xf32>, vector<16x16xf32>, vector<16x16xf32> -> vector<16x16xf32>
    %c0_8 = arith.constant 0 : index
    %c0_9 = arith.constant 0 : index
    %16 = vector.load %arg4[%c0_8, %c0_9] : memref<16x16xf32, #tpu.memory_space<vmem>>, vector<16x16xf32>
    tpu.vector_store %arg4[%c0_8, %c0_9], %15 {strides = array<i32>} : memref<16x16xf32, #tpu.memory_space<vmem>>, vector<16x16xf32>,
    return
  }
  func.func @transform_0(%arg0: i32) -> (i32, i32) {
    %c0_i32 = arith.constant 0 : i32
    %c0_i32_0 = arith.constant 0 : i32
    %c0_i32_1 = arith.constant 0 : i32
    return %c0_i32, %c0_i32_0 : i32, i32
  }
  func.func @transform_1(%arg0: i32) -> (i32, i32) {
    %c0_i32 = arith.constant 0 : i32
    %c0_i32_0 = arith.constant 0 : i32
    %c0_i32_1 = arith.constant 0 : i32
    return %c0_i32, %c0_i32_0 : i32, i32
  }
  func.func @transform_2(%arg0: i32) -> (i32, i32) {
    %c0_i32 = arith.constant 0 : i32
    %c0_i32_0 = arith.constant 0 : i32
    %c0_i32_1 = arith.constant 0 : i32
    return %c0_i32, %c0_i32_0 : i32, i32
  }
  func.func @transform_3(%arg0: i32) -> (i32, i32) {
    %c0_i32 = arith.constant 0 : i32
    %c0_i32_0 = arith.constant 0 : i32
    %c0_i32_1 = arith.constant 0 : i32
    return %c0_i32, %c0_i32_0 : i32, i32
  }
}

</mosaic_0001>

<bundles_post_ra>
// kernel: tpu_custom_call.1
= control target key start
LH: loop header
LB: loop body
LE: loop exit
PB: predicated region body
PF: predicated region fallthrough
CT: control target
= control target key end

     0   :  { %s268_s0 = inlined_call_operand.vmem [shape: f32[16,32], index: 0, kind: input, shape index: {}]   ;;  %s269_s1 = inlined_call_operand.vmem [shape: f32[32,16], index: 1, kind: input, shape index: {}]   ;;  %s270_s2 = inlined_call_operand.vmem [shape: f32[1,16], index: 2, kind: input, shape index: {}]   ;;  %s271_s3 = inlined_call_operand.hbm [shape: f32[16,16], index: 3, kind: output, shape index: {}]  }
   0x1   :  { %v20_v0 = vld [vmem:[%s269_s1 + $0x18] sm:$0xff]  ;;  %v19_v1 = vld [vmem:[%s269_s1 + $0x10] sm:$0xff]  ;;  %v18_v2 = vld [vmem:[%s269_s1 + $0x8] sm:$0xff] }
   0x2   :  { %165 = vmatpush.msra.mxu2 %v20_v0  ;;  %44 = vmatpush.msra.mxu0 %v20_v0 }
   0x3   :  { %8 = vsyncpa [#allocation3], 0  ;;  %v17_v3 = vld [vmem:[%s269_s1] sm:$0xff]  ;;  %v16_v4 = vld [vmem:[%s268_s0 + $0x8] sm:$0xff]  ;;  %vm25_vm0 = vcmask 261120   ;;  %vm55_vm1 = vcmask 130048  }
   0x4   :  { %166 = vmatpush.msra.mxu2 %v19_v1  ;;  %45 = vmatpush.msra.mxu0 %v19_v1  ;;  %v15_v5 = vld [vmem:[%s268_s0] sm:$0xff]  ;;  %s209_s0 = smov [#allocation2]   ;;  %s147_s27 = sshll.u32 %s271_s3, 4  ;;  %s148_s27 = int_to_ptr.hbm [resolvable:$true] %s147_s27 }
   0x5   :  { %v174_v6 = vld [vmem:[%s270_s2] ss:$0 sm:$0xff]  ;;  %s145_s1 = sshll.u32 %s209_s0, 4  ;;  %s210_s28 = smov 128   ;;  %s146_s1 = int_to_ptr.vmem [resolvable:$true] %s145_s1 }
   0x6   :  { %167 = vmatpush.msra.mxu2 %v18_v2  ;;  %46 = vmatpush.msra.mxu0 %v18_v2  ;;  %s211_s29 = smov 8  }
   0x8   :  { %168 = vmatpush.msra.mxu2 %v17_v3  ;;  %47 = vmatpush.msra.mxu0 %v17_v3 }
   0x9   :  { %160 = vmatmul.msk.f32.vlgmr.msra.gmra.mxu2 %vm25_vm0, %v16_v4  ;;  %159 = vmatmul.msk.f32.vlgmr.msra.gmra.mxu0 %vm25_vm0, %v15_v5 }
  0x86   :  { %v49_v8 = vpop.f32.mrf.mxu0 }
  0x87   :  { %v50_v11 = vadd.f32 %v174_v6, %v49_v8 }
  0x89   :  { %v56_v12 = vsel %vm55_vm1, %v50_v11, -inf }
  0x8c   :  { %v52_v7 = vpop.f32.mrf.mxu2 }
  0x8d   :  { %v53_v9 = vadd.f32 %v174_v6, %v52_v7 }
  0x8f   :  { %161 = vmatpush.xpose.msk.msra.mxu1 %vm55_vm1, %v53_v9  ;;  %169 = vmatpush.xpose.msk.msra.mxu3 %vm55_vm1, %v53_v9  ;;  %v59_v10 = vsel %vm55_vm1, %v53_v9, -inf }
  0x90   :  { %60 = vmax.xlane.f32.xlu0 %v59_v10 }
  0x93   :  { %162 = vmatpush.xpose.msk.msra.mxu1 %vm55_vm1, %v50_v11  ;;  %170 = vmatpush.xpose.msk.msra.mxu3 %vm55_vm1, %v50_v11 }
  0x98   :  { %57 = vmax.xlane.f32.xlu0 %v56_v12 }
 0x103   :  { %v61_v13 = vpop.xlane.xlu0 %60 }
 0x104   :  { %v63_v14 = vsub.f32 %v53_v9, %v61_v13 }
 0x106   :  { %v66_v15 = vmul.f32 1.442695, %v63_v14 }
 0x108   :  { %175 = vpow2.f32 %v66_v15 }
 0x10b   :  { %v58_v16 = vpop.xlane.xlu0 %57 }
 0x10c   :  { %v62_v17 = vsub.f32 %v50_v11, %v58_v16 }
 0x10e   :  { %v176_v18 = vpop.eup %175  ;;  %v64_v19 = vmul.f32 1.442695, %v62_v17 }
 0x10f   :  { %v71_v20 = vsel %vm55_vm1, %v176_v18, 0.0 }
 0x110   :  { %177 = vpow2.f32 %v64_v19  ;;  %72 = vadd.xlane.f32.xlu1 %v71_v20 }
 0x116   :  { %v178_v21 = vpop.eup %177 }
 0x117   :  { %v68_v22 = vsel %vm55_vm1, %v178_v21, 0.0 }
 0x118   :  { %69 = vadd.xlane.f32.xlu1 %v68_v22 }
 0x183   :  { %v73_v23 = vpop.xlane.xlu1 %72 }
 0x184   :  { %179 = vrcp.f32 %v73_v23  ;;  %v100_v28 = vand.u32 2147483648, %v73_v23  ;;  %v98_v30 = vand.u32 2147483647, %v73_v23  ;;  %vm94_vm3 = vweird.f32 %v73_v23 }
 0x186   :  { %v101_v33 = vor.u32 1.1754944e-38, %v100_v28  ;;  %vm99_vm5 = vcmp.eq.f32.partialorder %v98_v30, 8.507059e+37 }
 0x18a   :  { %v180_v24 = vpop.eup %179 }
 0x18b   :  { %v90_v25 = vmul.f32 %v180_v24, %v73_v23  ;;  %v70_v26 = vpop.xlane.xlu1 %69  ;;  %vm95_vm2 = vweird.f32 %v180_v24 }
 0x18c   :  { %181 = vrcp.f32 %v70_v26  ;;  %vm96_vm4 = vmor %vm94_vm3, %vm95_vm2  ;;  %v85_v39 = vand.u32 2147483648, %v70_v26  ;;  %v83_v41 = vand.u32 2147483647, %v70_v26  ;;  %vm79_vm7 = vweird.f32 %v70_v26 }
 0x18d   :  { %v91_v27 = vsub.f32 1.0, %v90_v25 }
 0x18e   :  { %v86_v43 = vor.u32 1.1754944e-38, %v85_v39  ;;  %vm84_vm9 = vcmp.eq.f32.partialorder %v83_v41, 8.507059e+37 }
 0x18f   :  { %v92_v29 = vmul.f32 %v180_v24, %v91_v27 }
 0x191   :  { %v93_v31 = vadd.f32 %v180_v24, %v92_v29 }
 0x192   :  { %v182_v32 = vpop.eup %181 }
 0x193   :  { %v75_v34 = vmul.f32 %v182_v32, %v70_v26  ;;  %v97_v35 = vsel %vm96_vm4, %v180_v24, %v93_v31  ;;  %vm80_vm6 = vweird.f32 %v182_v32 }
 0x194   :  { %v102_v36 = vsel %vm99_vm5, %v101_v33, %v97_v35  ;;  %vm81_vm8 = vmor %vm79_vm7, %vm80_vm6 }
 0x195   :  { %v76_v37 = vsub.f32 1.0, %v75_v34  ;;  %v103_v38 = vmul.f32 %v176_v18, %v102_v36 }
 0x197   :  { %v77_v40 = vmul.f32 %v182_v32, %v76_v37  ;;  %164 = vmatmul.msk.f32.vlgmr.msra.gmra.mxu3 %vm55_vm1, %v103_v38 }
 0x199   :  { %v78_v42 = vadd.f32 %v182_v32, %v77_v40 }
 0x19b   :  { %v82_v44 = vsel %vm81_vm8, %v182_v32, %v78_v42 }
 0x19c   :  { %v87_v45 = vsel %vm84_vm9, %v86_v43, %v82_v44 }
 0x19d   :  { %v88_v46 = vmul.f32 %v178_v21, %v87_v45 }
 0x19f   :  { %163 = vmatmul.msk.f32.vlgmr.msra.gmra.mxu1 %vm55_vm1, %v88_v46 }
 0x21a   :  { %v136_v47 = vpop.f32.mrf.mxu3 }
 0x21b   :  { %140 = vst.msk [vmem:[#allocation2 + $0x8] sm:$0xff] %vm55_vm1, %v136_v47 }
 0x21c   :  { %v133_v48 = vpop.f32.mrf.mxu1 }
 0x21d   :  { %139 = vst.msk [vmem:[#allocation2] sm:$0xff] %vm55_vm1, %v133_v48 }
 0x21e   :  { %153 = dma.vmem_to_hbm [thread:$0]  %s146_s1, 256, %s148_s27, [#allocation3], %s210_s28, %s210_s28, %s211_s29  }
 0x21f   :  { %207 = dma.done.wait [#allocation3], 256  }
 0x220   :  { %208 = vsyncadd [#allocation3], 4294967040 }
 0x221   :  { %158 = vsyncpa [#allocation3], 1 }

</bundles_post_ra>
